<compile_context>
chip_gen: v7x
topology: tpu7x:2x2x1
jax: 0.10.0
libtpu: 0.0.40
codegen_flags: <defaults>
</compile_context>

<pallas_src>
import functools

import jax
import jax.numpy as jnp
from jax.experimental import pallas as pl
from jax.experimental.pallas import tpu as pltpu


# ----------------------------------------------------------------------------
# Kernel
# ----------------------------------------------------------------------------
def _mlp_kernel(x_ref, *refs, num_layers, compute_dtype):
    """refs = (W0, b0, ..., W_{L-1}, b_{L-1}, out_ref).

    Layers 0..L-2 run transposed (activations (fan_out, tile): rows on the lane
    axis -> lane-dense VALU work and un-padded f32 intermediates). The final
    layer runs in the natural orientation so the output block is (tile, out_dim)
    and the kernel writes the (N, out_dim) result directly.
    """
    out_ref = refs[-1]
    params = refs[:-1]
    cdt = compute_dtype

    # Cast the streamed input *inside* the kernel (no standalone HBM convert pass).
    x = x_ref[...].astype(cdt)                                   # (tile, in_dim)

    if num_layers == 1:
        w = params[0][...]                                       # (in_dim, out_dim)
        b = params[1][...]                                       # (1, out_dim), f32
        out = jnp.dot(x, w, preferred_element_type=jnp.float32) + b
        out_ref[...] = out.astype(out_ref.dtype)
        return

    # First layer, transposed result: "NT" matmul (contract both minor dims)
    # keeps the big row axis on the MXU N / lane dimension.
    w0 = params[0][...]                                          # (h0, in_dim)
    b0 = params[1][...]                                          # (h0, 1), f32
    h_t = jax.lax.dot_general(
        w0, x, dimension_numbers=(((1,), (1,)), ((), ())),
        preferred_element_type=jnp.float32) + b0                 # (h0, tile)
    h_t = jnp.maximum(h_t, 0.0)                                  # ReLU in f32

    # Middle hidden layers: plain (fan_out, fan_in) @ (fan_in, tile).
    for layer in range(1, num_layers - 1):
        w = params[2 * layer][...]                               # (fan_out, fan_in)
        b = params[2 * layer + 1][...]                           # (fan_out, 1), f32
        h_t = jnp.dot(w, h_t.astype(cdt),
                      preferred_element_type=jnp.float32) + b
        h_t = jnp.maximum(h_t, 0.0)

    # Final layer in the natural orientation -> direct (tile, out_dim) store.
    # The (last_hidden, tile) -> (tile, last_hidden) transpose is a cheap,
    # (8,128)-aligned XLU job (XLU has slack here).
    w_last = params[2 * (num_layers - 1)][...]                   # (last_hidden, out_dim)
    b_last = params[2 * (num_layers - 1) + 1][...]               # (1, out_dim), f32
    h = h_t.T.astype(cdt)                                        # (tile, last_hidden)
    out = jnp.dot(h, w_last, preferred_element_type=jnp.float32) + b_last
    out_ref[...] = out.astype(out_ref.dtype)


# ----------------------------------------------------------------------------
# Sizing helpers
# ----------------------------------------------------------------------------
def _round_up(v, m):
    return ((int(v) + m - 1) // m) * m


def _padded_vmem_bytes(shape, dtype):
    """VMEM footprint of a block after (sublane, 128-lane) tiling/padding."""
    itemsize = jnp.dtype(dtype).itemsize
    sublane = max(8, 32 // max(itemsize, 1))          # 8 f32, 16 bf16, 32 int8
    if len(shape) == 1:
        r, c = 1, shape[0]
    else:
        r, c = shape[-2], shape[-1]
    lead = 1
    for d in shape[:-2]:
        lead *= int(d)
    return lead * _round_up(r, sublane) * _round_up(c, 128) * itemsize


def _vmem_capacity_bytes():
    try:
        return int(pltpu.get_tpu_info().vmem_capacity_bytes)
    except Exception:
        return 64 * 1024 * 1024                       # conservative (v7x-sized)


def _choose_tile_m(n_rows, requested, tile_cap):
    """128-aligned row tile; always >=2 grid steps when rows allow (v7x 2 TCs)."""
    def rnd128(v):
        return max(128, _round_up(v, 128))

    full = rnd128(n_rows)
    if requested is not None:
        return min(rnd128(requested), full)
    steps = 4 if n_rows >= 4 * tile_cap else 2
    return min(rnd128(pl.cdiv(n_rows, steps)), tile_cap, full)


# ----------------------------------------------------------------------------
# Wrapper
# ----------------------------------------------------------------------------
def mlp_forward(x, weights, biases, *, tile_m=None, compute_dtype=jnp.bfloat16,
                out_dtype=None):
    """x: (..., in_dim); weights[i]: (fan_in_i, fan_out_i); biases[i]: (fan_out_i,).

    compute_dtype: operand dtype for the matmuls (bf16 by default; f32 accumulate,
    bias and ReLU always in f32). out_dtype defaults to x.dtype (PyTorch parity);
    pass jnp.bfloat16 to halve the kernel writeback when downstream tolerates it.
    """
    num_layers = len(weights)
    assert num_layers == len(biases) and num_layers >= 1
    in_dim = int(x.shape[-1])
    out_dim = int(weights[-1].shape[-1])
    lead_shape = x.shape[:-1]
    out_dtype = x.dtype if out_dtype is None else jnp.dtype(out_dtype)

    # Flatten leading dims. x streams in its native dtype — no wrapper convert.
    x2d = x.reshape(-1, in_dim)
    n_rows = int(x2d.shape[0])

    vmem_cap = _vmem_capacity_bytes()
    big_vmem = vmem_cap >= 96 * 1024 * 1024           # v5e / v6e: 128 MiB VMEM
    tile_cap = 8192 if big_vmem else 4096             # v7x: 64 MiB physical
    limit_cap = (96 if big_vmem else 40) * 1024 * 1024

    # Kernel-ready parameter layout (tiny one-time ops vs. the x stream):
    #   layers 0..L-2 : W^T (fan_out, fan_in) compute dtype, b (fan_out, 1) f32
    #   layer  L-1    : W   (fan_in, fan_out) compute dtype, b (1, fan_out) f32
    params_flat, param_specs = [], []
    widths = [in_dim]
    for li, (w, b) in enumerate(zip(weights, biases)):
        w = jnp.asarray(w)
        b = jnp.asarray(b)
        widths.append(int(w.shape[1]))
        if num_layers == 1 or li == num_layers - 1:
            w_k = w.astype(compute_dtype)                             # (fan_in, fan_out)
            b_k = b.reshape(1, -1).astype(jnp.float32)                # (1, fan_out)
        else:
            w_k = w.T.astype(compute_dtype)                           # (fan_out, fan_in)
            b_k = b.reshape(-1, 1).astype(jnp.float32)                # (fan_out, 1)
        params_flat += [w_k, b_k]
        # Constant index_map -> parameters stay resident in VMEM across the grid.
        param_specs += [pl.BlockSpec(w_k.shape, lambda i: (0, 0)),
                        pl.BlockSpec(b_k.shape, lambda i: (0, 0))]

    max_width = max(widths)

    def vmem_estimate(tile):
        est = 2 * _padded_vmem_bytes((tile, in_dim), x2d.dtype)       # x (dbl-buffered)
        est += 2 * _padded_vmem_bytes((tile, out_dim), out_dtype)     # out (dbl-buffered)
        est += 2 * sum(_padded_vmem_bytes(p.shape, p.dtype) for p in params_flat)
        # live intermediates: transposed f32 activations + compute-dtype copies
        # + the transposed lhs of the final matmul (generous).
        est += 4 * _padded_vmem_bytes((max_width, tile), jnp.float32)
        est += 2 * _padded_vmem_bytes((tile, max_width), compute_dtype)
        return est

    tile = _choose_tile_m(n_rows, tile_m, tile_cap)
    while tile > 256 and vmem_estimate(tile) > limit_cap:
        tile = max(256, _round_up(tile // 2, 128))
    assert tile % 128 == 0

    # Ragged last tile: no jnp.pad of x (would be an extra HBM pass). Safe only
    # because every output row depends solely on its own input row (Pallas masks
    # the writeback); do NOT add cross-row ops (norms/reductions) to this kernel.
    grid = (pl.cdiv(n_rows, tile),)

    x_spec = pl.BlockSpec((tile, in_dim), lambda i: (i, 0))
    out_spec = pl.BlockSpec((tile, out_dim), lambda i: (i, 0))

    vmem_limit = int(min(limit_cap,
                         max(32 * 1024 * 1024, int(1.25 * vmem_estimate(tile)))))

    flops = 2 * n_rows * sum(widths[i] * widths[i + 1] for i in range(num_layers))
    bytes_accessed = (n_rows * in_dim * jnp.dtype(x2d.dtype).itemsize
                      + n_rows * out_dim * jnp.dtype(out_dtype).itemsize
                      + sum(int(p.size) * p.dtype.itemsize for p in params_flat))
    cost = pl.CostEstimate(flops=flops, transcendentals=0,
                           bytes_accessed=bytes_accessed)

    kernel = functools.partial(_mlp_kernel, num_layers=num_layers,
                               compute_dtype=compute_dtype)

    out2d = pl.pallas_call(
        kernel,
        out_shape=jax.ShapeDtypeStruct((n_rows, out_dim), out_dtype),
        grid_spec=pltpu.PrefetchScalarGridSpec(
            num_scalar_prefetch=0,
            grid=grid,
            in_specs=[x_spec] + param_specs,
            out_specs=out_spec,
        ),
        compiler_params=pltpu.CompilerParams(
            dimension_semantics=("parallel",),
            vmem_limit_bytes=vmem_limit),
        cost_estimate=cost,
    )(x2d, *params_flat)

    return out2d.reshape(*lead_shape, out_dim)


# ----------------------------------------------------------------------------
# Params init (matches nn.Linear default init; weights stored as (in, out))
# ----------------------------------------------------------------------------
def init_mlp_params(key, in_dim, out_dim, hidden_list, dtype=jnp.float32):
    dims = [in_dim] + list(hidden_list) + [out_dim]
    weights, biases = [], []
    for i in range(len(dims) - 1):
        key, kw, kb = jax.random.split(key, 3)
        fan_in, fan_out = dims[i], dims[i + 1]
        bound = 1.0 / (fan_in ** 0.5)
        w = jax.random.uniform(kw, (fan_in, fan_out), dtype, -bound, bound)
        b = jax.random.uniform(kb, (fan_out,), dtype, -bound, bound)
        weights.append(w)
        biases.append(b)
    return weights, biases


if __name__ == "__main__":
    key = jax.random.PRNGKey(0)

    # Small shapes consistent with the module: LIIF's MLP maps per-query
    # feature vectors (..., in_dim) -> (..., out_dim).
    in_dim, out_dim = 8, 3
    hidden_list = [32, 32]
    batch, seq = 2, 256  # x: (2, 256, 8) -> flattened to (512, 8)

    key, kx, kp = jax.random.split(key, 3)
    x = jax.random.normal(kx, (batch, seq, in_dim), jnp.float32)
    weights, biases = init_mlp_params(kp, in_dim, out_dim, hidden_list)

    out = mlp_forward(x, weights, biases)
    out = jax.block_until_ready(out)

    # Reference in plain JAX, matching the kernel's math (bf16 operands,
    # f32 accumulation / bias / ReLU).
    cdt = jnp.bfloat16
    h = x.reshape(-1, in_dim)
    for i, (w, b) in enumerate(zip(weights, biases)):
        h = jnp.dot(h.astype(cdt), w.astype(cdt),
                    preferred_element_type=jnp.float32) + b.astype(jnp.float32)
        if i != len(weights) - 1:
            h = jnp.maximum(h, 0.0)
    ref = h.reshape(batch, seq, out_dim)

    assert out.shape == (batch, seq, out_dim)
    assert out.dtype == x.dtype
    max_err = float(jnp.max(jnp.abs(out.astype(jnp.float32) - ref)))
    assert max_err < 1e-2, f"max abs err {max_err}"

    print("KERNEL_OK")
</pallas_src>

<mosaic_0001>
module attributes {stable_mosaic.version = 11 : i64} {
  func.func @_mlp_kernel(%arg0: i32, %arg1: memref<256x8xf32, #tpu.memory_space<vmem>>, %arg2: memref<32x8xbf16, #tpu.memory_space<vmem>>, %arg3: memref<32x1xf32, #tpu.memory_space<vmem>>, %arg4: memref<32x32xbf16, #tpu.memory_space<vmem>>, %arg5: memref<32x1xf32, #tpu.memory_space<vmem>>, %arg6: memref<32x3xbf16, #tpu.memory_space<vmem>>, %arg7: memref<1x3xf32, #tpu.memory_space<vmem>>, %arg8: memref<256x3xf32, #tpu.memory_space<vmem>>) attributes {dimension_semantics = [#tpu.dimension_semantics<parallel>], iteration_bounds = array<i64: 2>, scalar_prefetch = 0 : i64, scratch_operands = 0 : i64, tpu.core_type = #tpu.core_type<tc>, window_params = [{transform_indices = @transform_0, window_bounds = array<i64: 256, 8>}, {pipeline_mode = #tpu.pipeline_mode<synchronous>, transform_indices = @transform_1, window_bounds = array<i64: 32, 8>}, {pipeline_mode = #tpu.pipeline_mode<synchronous>, transform_indices = @transform_2, window_bounds = array<i64: 32, 1>}, {pipeline_mode = #tpu.pipeline_mode<synchronous>, transform_indices = @transform_3, window_bounds = array<i64: 32, 32>}, {pipeline_mode = #tpu.pipeline_mode<synchronous>, transform_indices = @transform_4, window_bounds = array<i64: 32, 1>}, {pipeline_mode = #tpu.pipeline_mode<synchronous>, transform_indices = @transform_5, window_bounds = array<i64: 32, 3>}, {pipeline_mode = #tpu.pipeline_mode<synchronous>, transform_indices = @transform_6, window_bounds = array<i64: 1, 3>}, {transform_indices = @transform_7, window_bounds = array<i64: 256, 3>}]} {
    %c0 = arith.constant 0 : index
    %c0_0 = arith.constant 0 : index
    %0 = vector.load %arg1[%c0, %c0_0] : memref<256x8xf32, #tpu.memory_space<vmem>>, vector<256x8xf32>
    %1 = arith.truncf %0 : vector<256x8xf32> to vector<256x8xbf16>
    %c0_1 = arith.constant 0 : index
    %c0_2 = arith.constant 0 : index
    %2 = vector.load %arg2[%c0_1, %c0_2] : memref<32x8xbf16, #tpu.memory_space<vmem>>, vector<32x8xbf16>
    %c0_3 = arith.constant 0 : index
    %c0_4 = arith.constant 0 : index
    %3 = vector.load %arg3[%c0_3, %c0_4] : memref<32x1xf32, #tpu.memory_space<vmem>>, vector<32x1xf32>
    %cst = arith.constant dense<0.000000e+00> : vector<32x256xf32>
    %4 = tpu.matmul %2, %1, %cst {dimension_numbers = #tpu.dot_dimension_numbers<[1], [1], [0], [0], [0, 0, 1, 0], [], []>} : vector<32x8xbf16>, vector<256x8xbf16>, vector<32x256xf32> -> vector<32x256xf32>
    %5 = vector.broadcast %3 : vector<32x1xf32> to vector<32x256xf32>
    %6 = arith.addf %4, %5 : vector<32x256xf32>
    %cst_5 = arith.constant 0.000000e+00 : f32
    %7 = vector.broadcast %cst_5 : f32 to vector<32x256xf32>
    %8 = arith.maximumf %6, %7 : vector<32x256xf32>
    %c0_6 = arith.constant 0 : index
    %c0_7 = arith.constant 0 : index
    %9 = vector.load %arg4[%c0_6, %c0_7] : memref<32x32xbf16, #tpu.memory_space<vmem>>, vector<32x32xbf16>
    %c0_8 = arith.constant 0 : index
    %c0_9 = arith.constant 0 : index
    %10 = vector.load %arg5[%c0_8, %c0_9] : memref<32x1xf32, #tpu.memory_space<vmem>>, vector<32x1xf32>
    %11 = arith.truncf %8 : vector<32x256xf32> to vector<32x256xbf16>
    %cst_10 = arith.constant dense<0.000000e+00> : vector<32x256xf32>
    %12 = tpu.matmul %9, %11, %cst_10 {dimension_numbers = #tpu.dot_dimension_numbers<[1], [0], [0], [1], [0, 0, 1, 1], [], []>} : vector<32x32xbf16>, vector<32x256xbf16>, vector<32x256xf32> -> vector<32x256xf32>
    %13 = vector.broadcast %10 : vector<32x1xf32> to vector<32x256xf32>
    %14 = arith.addf %12, %13 : vector<32x256xf32>
    %cst_11 = arith.constant 0.000000e+00 : f32
    %15 = vector.broadcast %cst_11 : f32 to vector<32x256xf32>
    %16 = arith.maximumf %14, %15 : vector<32x256xf32>
    %c0_12 = arith.constant 0 : index
    %c0_13 = arith.constant 0 : index
    %17 = vector.load %arg6[%c0_12, %c0_13] : memref<32x3xbf16, #tpu.memory_space<vmem>>, vector<32x3xbf16>
    %c0_14 = arith.constant 0 : index
    %c0_15 = arith.constant 0 : index
    %18 = vector.load %arg7[%c0_14, %c0_15] : memref<1x3xf32, #tpu.memory_space<vmem>>, vector<1x3xf32>
    %19 = tpu.transpose %16, [1, 0] : vector<32x256xf32> -> vector<256x32xf32>
    %20 = arith.truncf %19 : vector<256x32xf32> to vector<256x32xbf16>
    %cst_16 = arith.constant dense<0.000000e+00> : vector<256x3xf32>
    %21 = tpu.matmul %20, %17, %cst_16 {dimension_numbers = #tpu.dot_dimension_numbers<[1], [0], [0], [1], [0, 0, 1, 1], [], []>} : vector<256x32xbf16>, vector<32x3xbf16>, vector<256x3xf32> -> vector<256x3xf32>
    %22 = vector.broadcast %18 : vector<1x3xf32> to vector<256x3xf32>
    %23 = arith.addf %21, %22 : vector<256x3xf32>
    %c0_17 = arith.constant 0 : index
    %c0_18 = arith.constant 0 : index
    %24 = vector.load %arg8[%c0_17, %c0_18] : memref<256x3xf32, #tpu.memory_space<vmem>>, vector<256x3xf32>
    tpu.vector_store %arg8[%c0_17, %c0_18], %23 {strides = array<i32>} : memref<256x3xf32, #tpu.memory_space<vmem>>, vector<256x3xf32>,
    return
  }
  func.func @transform_0(%arg0: i32) -> (i32, i32) {
    %c0_i32 = arith.constant 0 : i32
    %c0_i32_0 = arith.constant 0 : i32
    return %arg0, %c0_i32 : i32, i32
  }
  func.func @transform_1(%arg0: i32) -> (i32, i32) {
    %c0_i32 = arith.constant 0 : i32
    %c0_i32_0 = arith.constant 0 : i32
    %c0_i32_1 = arith.constant 0 : i32
    return %c0_i32, %c0_i32_0 : i32, i32
  }
  func.func @transform_2(%arg0: i32) -> (i32, i32) {
    %c0_i32 = arith.constant 0 : i32
    %c0_i32_0 = arith.constant 0 : i32
    %c0_i32_1 = arith.constant 0 : i32
    return %c0_i32, %c0_i32_0 : i32, i32
  }
  func.func @transform_3(%arg0: i32) -> (i32, i32) {
    %c0_i32 = arith.constant 0 : i32
    %c0_i32_0 = arith.constant 0 : i32
    %c0_i32_1 = arith.constant 0 : i32
    return %c0_i32, %c0_i32_0 : i32, i32
  }
  func.func @transform_4(%arg0: i32) -> (i32, i32) {
    %c0_i32 = arith.constant 0 : i32
    %c0_i32_0 = arith.constant 0 : i32
    %c0_i32_1 = arith.constant 0 : i32
    return %c0_i32, %c0_i32_0 : i32, i32
  }
  func.func @transform_5(%arg0: i32) -> (i32, i32) {
    %c0_i32 = arith.constant 0 : i32
    %c0_i32_0 = arith.constant 0 : i32
    %c0_i32_1 = arith.constant 0 : i32
    return %c0_i32, %c0_i32_0 : i32, i32
  }
  func.func @transform_6(%arg0: i32) -> (i32, i32) {
    %c0_i32 = arith.constant 0 : i32
    %c0_i32_0 = arith.constant 0 : i32
    %c0_i32_1 = arith.constant 0 : i32
    return %c0_i32, %c0_i32_0 : i32, i32
  }
  func.func @transform_7(%arg0: i32) -> (i32, i32) {
    %c0_i32 = arith.constant 0 : i32
    %c0_i32_0 = arith.constant 0 : i32
    return %arg0, %c0_i32 : i32, i32
  }
}

</mosaic_0001>

<bundles_post_ra>
// kernel: tpu_custom_call.1
= control target key start
LH: loop header
LB: loop body
LE: loop exit
PB: predicated region body
PF: predicated region fallthrough
CT: control target
= control target key end

     0   :  { %s1183_s24 = smov 0   ;;  %s1432_s0 = inlined_call_operand.vmem [shape: f32[512,8], index: 0, kind: input, shape index: {}]   ;;  %s1433_s1 = inlined_call_operand.vmem [shape: bf16[32,8], index: 1, kind: input, shape index: {}]   ;;  %s1434_s2 = inlined_call_operand.vmem [shape: f32[32,1], index: 2, kind: input, shape index: {}]   ;;  %s1435_s3 = inlined_call_operand.vmem [shape: bf16[32,32], index: 3, kind: input, shape index: {}]   ;;  %s1436_s4 = inlined_call_operand.vmem [shape: f32[32,1], index: 4, kind: input, shape index: {}]   ;;  %s1437_s5 = inlined_call_operand.vmem [shape: bf16[32,3], index: 5, kind: input, shape index: {}]   ;;  %s1438_s6 = inlined_call_operand.vmem [shape: f32[1,3], index: 6, kind: input, shape index: {}]   ;;  %s1439_s7 = inlined_call_operand.vmem [shape: f32[512,3], index: 7, kind: output, shape index: {}]  }
   0x1 LB: > { %s996_s25 = sadd.s32 4294967295, %s1140_s24   ;;  %p1000_p0 = scmp.ge.s32.totalorder %s1140_s24, 1  ;;  %s1140_s24 = sphi %s1183_s24, %s17_s24  }
   0x2   : > { %p238_p1 = scmp.lt.s32.totalorder %s1140_s24, 3 }
   0x4   : > { %p239_p2 = pnand %p1000_p0, %p238_p1 }
   0x5   : > { %s1001_s26 = sshll.u32 (!%p239_p2), %s996_s25, 5  ;;  %v1194_v0 = vld [vmem:[%s1433_s1] sm:$0xff] (!%p239_p2)   ;;  %vm369_vm0 = vcmask (!%p239_p2), 64512   ;;  %v337_v2 = vld [vmem:[%s1434_s2 + $0x10] sm:$0xff] (!%p239_p2)  ;;  %v1142_v3 = vmov (!%p239_p2), 0   ;;  %v336_v4 = vld [vmem:[%s1434_s2 + $0x8] sm:$0xff] (!%p239_p2) }
   0x6   : > { %242 = sbr.rel (%p239_p2) target bundleno = 974 (0x3ce), region = 48  ;;  %p271_p3 = scmp.lt.s32.totalorder (!%p239_p2), %s1001_s26, 63  ;;  %v335_v1 = vld [vmem:[%s1434_s2] sm:$0xff] (!%p239_p2)  ;;  %1050 = vmatprep.mubr.msk.bf16.mxu0 (!%p239_p2), %vm369_vm0, %v1194_v0  ;;  %1126 = vset.pattern.permute.xlu0 (!%p239_p2), %v1142_v3  ;;  %v338_v5 = vld [vmem:[%s1434_s2 + $0x18] sm:$0xff] (!%p239_p2)  ;;  %v490_v18 = vld [vmem:[%s1436_s4 + $0x8] sm:$0xff] (!%p239_p2)  ;;  %vm527_vm1 = vcmask (!%p239_p2), 261120  }
   0x7   : > { %341 = vperm.xlu0 (!%p239_p2), %1126, %v335_v1   ;;  %1127 = vset.pattern.permute.xlu1 (!%p239_p2), %v1142_v3  ;;  %v489_v15 = vld [vmem:[%s1436_s4] sm:$0xff] (!%p239_p2)  ;;  %v491_v21 = vld [vmem:[%s1436_s4 + $0x10] sm:$0xff] (!%p239_p2)  ;;  %v492_v24 = vld [vmem:[%s1436_s4 + $0x18] sm:$0xff] (!%p239_p2)  ;;  %vm907_vm2 = vcmask (!%p239_p2), 23552  }
   0x8   : > { %351 = vperm.xlu1 (!%p239_p2), %1127, %v337_v2   ;;  %566 = vmatprep.mubr.bf16.mxu1 (!%p239_p2), %v1142_v3 }
   0xb   : > { %346 = vperm.xlu0 (!%p239_p2), %1126, %v336_v4   ;;  %v1129_v4 = vld [vmem:[%s1433_s1 + $0x8] sm:$0xff] (!%p239_p2)  }
   0xc   : > { %356 = vperm.xlu1 (!%p239_p2), %1127, %v338_v5  }
   0xd   : > { %s1441_s26 = smov (!%p271_p3, %s1001_s26), 63 }
   0xe   : > { %s1002_s12 = sshll.u32 %s1441_s26, 3 }
   0xf   : > { %s1221_s17 = scalar_lea.vmem %s1432_s0, %s1002_s12  ;;  %499 = vperm.xlu0 %1126, %v489_v15   ;;  %s1331_s20 = scalar_lea.vmem %s1439_s7, %s1002_s12 }
  0x10   : > { %v299_v6 = vld [vmem:[%s1221_s17 + $0x80] sm:$0xff]  ;;  %v300_v7 = vld [vmem:[%s1221_s17 + $0x88] sm:$0xff]  ;;  %v301_v11 = vld [vmem:[%s1221_s17 + $0x90] sm:$0xff]  ;;  %504 = vperm.xlu1 %1127, %v490_v18  }
  0x11   : > { %v283_v8 = vld [vmem:[%s1221_s17] sm:$0xff]  ;;  %v323_v9 = vpack.c.bf16 %v300_v7, %v299_v6  ;;  %v284_v10 = vld [vmem:[%s1221_s17 + $0x8] sm:$0xff]  ;;  %v302_v12 = vld [vmem:[%s1221_s17 + $0x98] sm:$0xff] }
  0x12   : > { %v315_v13 = vpack.c.bf16 %v284_v10, %v283_v8  ;;  %v324_v14 = vpack.c.bf16 %v302_v12, %v301_v11  ;;  %v285_v16 = vld [vmem:[%s1221_s17 + $0x10] sm:$0xff]  ;;  %v286_v17 = vld [vmem:[%s1221_s17 + $0x18] sm:$0xff]  ;;  %v303_v22 = vld [vmem:[%s1221_s17 + $0xa0] sm:$0xff] }
  0x13   : > { %1108 = vmatprep.subr.msk.bf16.mxu0 %vm369_vm0, %v323_v9  ;;  %v316_v20 = vpack.c.bf16 %v286_v17, %v285_v16  ;;  %v304_v23 = vld [vmem:[%s1221_s17 + $0xa8] sm:$0xff]  ;;  %509 = vperm.xlu0 %1126, %v491_v21   ;;  %v287_v27 = vld [vmem:[%s1221_s17 + $0x20] sm:$0xff]  ;;  %v305_v30 = vld [vmem:[%s1221_s17 + $0xb0] sm:$0xff] }
  0x14   : > { %v377_v19 = vsel %vm369_vm0, %v315_v13, 0  ;;  %v325_v26 = vpack.c.bf16 %v304_v23, %v303_v22  ;;  %514 = vperm.xlu1 %1127, %v492_v24   ;;  %v288_v28 = vld [vmem:[%s1221_s17 + $0x28] sm:$0xff]  ;;  %v306_v31 = vld [vmem:[%s1221_s17 + $0xb8] sm:$0xff]  ;;  %v289_v34 = vld [vmem:[%s1221_s17 + $0x30] sm:$0xff] }
  0x15   : > { %1035 = vmatpush3.bf16.xpose.msra.mxu0 %v377_v19  ;;  %v380_v25 = vsel %vm369_vm0, %v316_v20, 0  ;;  %v317_v29 = vpack.c.bf16 %v288_v28, %v287_v27  ;;  %v326_v33 = vpack.c.bf16 %v306_v31, %v305_v30  ;;  %v290_v35 = vld [vmem:[%s1221_s17 + $0x38] sm:$0xff]  ;;  %v307_v37 = vld [vmem:[%s1221_s17 + $0xc0] sm:$0xff]  ;;  %v308_v38 = vld [vmem:[%s1221_s17 + $0xc8] sm:$0xff] }
  0x16   : > { %1109 = vmatprep.subr.msk.bf16.mxu0 %vm369_vm0, %v324_v14  ;;  %v318_v36 = vpack.c.bf16 %v290_v35, %v289_v34  ;;  %v327_v40 = vpack.c.bf16 %v308_v38, %v307_v37  ;;  %v291_v41 = vld [vmem:[%s1221_s17 + $0x40] sm:$0xff]  ;;  %v292_v42 = vld [vmem:[%s1221_s17 + $0x48] sm:$0xff]  ;;  %v309_v44 = vld [vmem:[%s1221_s17 + $0xd0] sm:$0xff] }
  0x17   : > { %v383_v32 = vsel %vm369_vm0, %v317_v29, 0  ;;  %v319_v43 = vpack.c.bf16 %v292_v42, %v291_v41  ;;  %v310_v45 = vld [vmem:[%s1221_s17 + $0xd8] sm:$0xff]  ;;  %v293_v48 = vld [vmem:[%s1221_s17 + $0x50] sm:$0xff]  ;;  %v311_v51 = vld [vmem:[%s1221_s17 + $0xe0] sm:$0xff] }
  0x18   : > { %v386_v39 = vsel %vm369_vm0, %v318_v36, 0  ;;  %v328_v47 = vpack.c.bf16 %v310_v45, %v309_v44  ;;  %v294_v49 = vld [vmem:[%s1221_s17 + $0x58] sm:$0xff]  ;;  %v312_v52 = vld [vmem:[%s1221_s17 + $0xe8] sm:$0xff]  ;;  %v295_v55 = vld [vmem:[%s1221_s17 + $0x60] sm:$0xff] }
  0x19   : > { %v389_v46 = vsel %vm369_vm0, %v319_v43, 0  ;;  %v320_v50 = vpack.c.bf16 %v294_v49, %v293_v48  ;;  %v329_v54 = vpack.c.bf16 %v312_v52, %v311_v51  ;;  %v296_v56 = vld [vmem:[%s1221_s17 + $0x68] sm:$0xff]  ;;  %v313_v58 = vld [vmem:[%s1221_s17 + $0xf0] sm:$0xff]  ;;  %v314_v59 = vld [vmem:[%s1221_s17 + $0xf8] sm:$0xff] }
  0x1a   : > { %v321_v57 = vpack.c.bf16 %v296_v56, %v295_v55  ;;  %v330_v61 = vpack.c.bf16 %v314_v59, %v313_v58  ;;  %v297_v62 = vld [vmem:[%s1221_s17 + $0x70] sm:$0xff]  ;;  %v298_v63 = vld [vmem:[%s1221_s17 + $0x78] sm:$0xff]  ;;  %v1130_v36 = vld [vmem:[%s1435_s3] sm:$0xff]  }
  0x1b   : > { %v392_v53 = vsel %vm369_vm0, %v320_v50, 0  ;;  %v322_v1 = vpack.c.bf16 %v298_v63, %v297_v62  ;;  %v1131_v37 = vld [vmem:[%s1435_s3 + $0x8] sm:$0xff]   ;;  %v1132_v58 = vld [vmem:[%s1437_s5] sm:$0xff]  }
  0x1c   : > { %v395_v60 = vsel %vm369_vm0, %v321_v57, 0 }
  0x1d   : > { %1037 = vmatpush3.bf16.xpose.msra.mxu0 %v380_v25  ;;  %v398_v2 = vsel %vm369_vm0, %v322_v1, 0  ;;  %v1133_v1 = vld [vmem:[%s1437_s5 + $0x8] sm:$0xff]  }
  0x1e   : > { %1110 = vmatprep.subr.msk.bf16.mxu0 %vm369_vm0, %v325_v26 }
  0x25   : > { %1039 = vmatpush3.bf16.xpose.msra.mxu0 %v383_v32 }
  0x26   : > { %1111 = vmatprep.subr.msk.bf16.mxu0 %vm369_vm0, %v326_v33 }
  0x2d   : > { %1041 = vmatpush3.bf16.xpose.msra.mxu0 %v386_v39 }
  0x2e   : > { %1112 = vmatprep.subr.msk.bf16.mxu0 %vm369_vm0, %v327_v40 }
  0x35   : > { %1043 = vmatpush3.bf16.xpose.msra.mxu0 %v389_v46 }
  0x36   : > { %1113 = vmatprep.subr.msk.bf16.mxu0 %vm369_vm0, %v328_v47 }
  0x3d   : > { %1045 = vmatpush3.bf16.xpose.msra.mxu0 %v392_v53 }
  0x3e   : > { %1114 = vmatprep.subr.msk.bf16.mxu0 %vm369_vm0, %v329_v54 }
  0x45   : > { %1047 = vmatpush3.bf16.xpose.msra.mxu0 %v395_v60 }
  0x46   : > { %1115 = vmatprep.subr.msk.bf16.mxu0 %vm369_vm0, %v330_v61 }
  0x4d   : > { %1049 = vmatpush3.bf16.xpose.msra.mxu0 %v398_v2 }
  0x54   : > { %1051 = vmatmul.mubr.msk.bf16.vlgmr.msra.gmra.mrb[0].mxu0 %vm369_vm0, %v1194_v0 }
  0x55   : > { %1052 = vmatprep.mubr.msk.bf16.mxu0 %vm369_vm0, %v1129_v4 }
  0x5c   : > { %1053 = vmatmul.mubr.msk.bf16.gmra.mrb[4].mxu0 %vm369_vm0, %v1129_v4 }
  0x86   : > { %v342_v5 = vpop.permute.xlu0 %341 }
  0x87   : > { %v352_v14 = vpop.permute.xlu1 %351 }
  0x8a   : > { %v347_v9 = vpop.permute.xlu0 %346 }
  0x8b   : > { %v357_v24 = vpop.permute.xlu1 %356 }
  0x8e   : > { %v500_v38 = vpop.permute.xlu0 %499 }
  0x8f   : > { %v505_v42 = vpop.permute.xlu1 %504 }
  0x92   : > { %v510_v50 = vpop.permute.xlu0 %509 }
  0x93   : > { %v515_v55 = vpop.permute.xlu1 %514 }
 0x127   : > { %v458_v6 = vpop.f32.mrb[0].mxu0 }
 0x128   : > { %v459_v7 = vadd.f32 %v458_v6, %v342_v5  ;;  %v460_v8 = vpop.f32.mrb[1].mxu0 }
 0x129   : > { %v461_v10 = vadd.f32 %v460_v8, %v342_v5  ;;  %v462_v11 = vpop.f32.mrb[2].mxu0 }
 0x12a   : > { %v463_v12 = vadd.f32 %v462_v11, %v347_v9  ;;  %v464_v13 = vpop.f32.mrb[3].mxu0  ;;  %v477_v16 = vmax.f32 %v459_v7, 0.0 }
 0x12b   : > { %v465_v15 = vadd.f32 %v464_v13, %v347_v9  ;;  %v478_v18 = vmax.f32 %v461_v10, 0.0 }
 0x12c   : > { %v479_v17 = vmax.f32 %v463_v12, 0.0 }
 0x12d   : > { %v480_v19 = vmax.f32 %v465_v15, 0.0 }
 0x12e   : > { %v493_v0 = vpack.c.bf16 %v479_v17, %v477_v16 }
 0x12f   : > { %v468_v20 = vpop.f32.mrb[4].mxu0  ;;  %v494_v21 = vpack.c.bf16 %v480_v19, %v478_v18 }
 0x130   : > { %v469_v22 = vadd.f32 %v468_v20, %v352_v14  ;;  %v470_v23 = vpop.f32.mrb[5].mxu0 }
 0x131   : > { %v471_v25 = vadd.f32 %v470_v23, %v352_v14  ;;  %v472_v26 = vpop.f32.mrb[6].mxu0  ;;  %534 = vmatprep.subr.bf16.mxu1 %v494_v21 }
 0x132   : > { %v473_v27 = vadd.f32 %v472_v26, %v357_v24  ;;  %v474_v28 = vpop.f32.mrb[7].mxu0  ;;  %535 = vmatpush1.bf16.msra.mxu1 %v493_v0  ;;  %v481_v30 = vmax.f32 %v469_v22, 0.0 }
 0x133   : > { %v475_v29 = vadd.f32 %v474_v28, %v357_v24  ;;  %v482_v32 = vmax.f32 %v471_v25, 0.0 }
 0x134   : > { %v483_v31 = vmax.f32 %v473_v27, 0.0 }
 0x135   : > { %v484_v33 = vmax.f32 %v475_v29, 0.0 }
 0x136   : > { %v495_v34 = vpack.c.bf16 %v483_v31, %v481_v30 }
 0x137   : > { %v496_v35 = vpack.c.bf16 %v484_v33, %v482_v32 }
 0x139   : > { %536 = vmatprep.subr.bf16.mxu1 %v496_v35 }
 0x13a   : > { %537 = vmatpush1.bf16.msra.mxu1 %v495_v34 }
 0x13b   : > { %1072 = vmatprep.subr.bf16.mxu1 %v1132_v58 }
 0x13d   : > { %1011 = vmatmul.mubr.msk.bf16.vlgmr.msra.gmra.mrb[0].mxu1 %vm527_vm1, %v1130_v36 }
 0x13e   : > { %576 = vmatprep.mubr.bf16.mxu1 %v1142_v3  ;;  %1073 = vmatpush3.bf16.msra.mxu1 %v1132_v58 }
 0x13f   : > { %1074 = vmatprep.subr.bf16.mxu1 %v1133_v1 }
 0x142   : > { %1075 = vmatpush3.bf16.msra.mxu1 %v1133_v1 }
 0x145   : > { %1012 = vmatmul.mubr.msk.bf16.gmra.mrb[4].mxu1 %vm527_vm1, %v1131_v37 }
 0x210   : > { %v568_v39 = vpop.f32.mrb[0].mxu1 }
 0x211   : > { %v569_v40 = vadd.f32 %v568_v39, %v500_v38  ;;  %v570_v41 = vpop.f32.mrb[1].mxu1 }
 0x212   : > { %v571_v43 = vadd.f32 %v570_v41, %v500_v38  ;;  %v572_v44 = vpop.f32.mrb[2].mxu1 }
 0x213   : > { %v587_v45 = vmax.f32 %v569_v40, 0.0  ;;  %v573_v46 = vadd.f32 %v572_v44, %v505_v42  ;;  %v574_v47 = vpop.f32.mrb[3].mxu1 }
 0x214   : > { %v588_v48 = vmax.f32 %v571_v43, 0.0  ;;  %v575_v49 = vadd.f32 %v574_v47, %v505_v42 }
 0x215   : > { %600 = vxpose.xlu0.b32.start [1/4] (short) %v587_v45, 128  ;;  %v589_v3 = vmax.f32 %v573_v46, 0.0 }
 0x216   : > { %632 = vxpose.xlu1.b32.start [1/4] (short) %v588_v48, 128  ;;  %v590_v51 = vmax.f32 %v575_v49, 0.0 }
 0x218   : > { %v578_v52 = vpop.f32.mrb[4].mxu1 }
 0x219   : > { %v579_v53 = vadd.f32 %v578_v52, %v510_v50  ;;  %v580_v54 = vpop.f32.mrb[5].mxu1  ;;  %601 = vxpose.xlu0.b32.cont [2/4] (short) %v589_v3, 128 }
 0x21a   : > { %v581_v56 = vadd.f32 %v580_v54, %v510_v50  ;;  %v582_v57 = vpop.f32.mrb[6].mxu1  ;;  %633 = vxpose.xlu1.b32.cont [2/4] (short) %v590_v51, 128  ;;  %v1324_v51 = vld [vmem:[%s1438_s6] ss:$0 sm:$0xff] }
 0x21b   : > { %v591_v59 = vmax.f32 %v579_v53, 0.0  ;;  %v583_v60 = vadd.f32 %v582_v57, %v515_v55  ;;  %v584_v61 = vpop.f32.mrb[7].mxu1 }
 0x21c   : > { %v592_v62 = vmax.f32 %v581_v56, 0.0  ;;  %v585_v63 = vadd.f32 %v584_v61, %v515_v55 }
 0x21d   : > { %602 = vxpose.xlu0.b32.cont [3/4] (short) %v591_v59, 128  ;;  %v593_v2 = vmax.f32 %v583_v60, 0.0 }
 0x21e   : > { %634 = vxpose.xlu1.b32.cont [3/4] (short) %v592_v62, 128  ;;  %v594_v4 = vmax.f32 %v585_v63, 0.0 }
 0x221   : > { %603 = vxpose.xlu0.b32.end [4/4] (short) %v593_v2, 128 }
 0x222   : > { %635 = vxpose.xlu1.b32.end [4/4] (short) %v594_v4, 128 }
 0x295   : > { %v616_v5 = vpop.trf.xlu0 }
 0x296   : > { %v648_v6 = vpop.trf.xlu1 }
 0x299   : > { %v617_v7 = vpop.trf.xlu0 }
 0x29a   : > { %v664_v8 = vpack.c.bf16 %v617_v7, %v616_v5  ;;  %v649_v9 = vpop.trf.xlu1 }
 0x29b   : > { %v672_v39 = vpack.c.bf16 %v649_v9, %v648_v6 }
 0x29c   : > { %1076 = vmatprep.mubr.msk.bf16.mxu1 %vm527_vm1, %v664_v8 }
 0x29d   : > { %v618_v10 = vpop.trf.xlu0 }
 0x29e   : > { %v650_v12 = vpop.trf.xlu1 }
 0x2a1   : > { %v619_v11 = vpop.trf.xlu0 }
 0x2a2   : > { %v665_v13 = vpack.c.bf16 %v619_v11, %v618_v10  ;;  %v651_v15 = vpop.trf.xlu1 }
 0x2a3   : > { %v673_v41 = vpack.c.bf16 %v651_v15, %v650_v12 }
 0x2a4   : > { %1077 = vmatmul.mubr.msk.bf16.vlgmr.msra.gmra.mrb[8].mxu1 %vm527_vm1, %v665_v13 }
 0x2a5   : > { %v620_v14 = vpop.trf.xlu0 }
 0x2a6   : > { %v652_v19 = vpop.trf.xlu1 }
 0x2a9   : > { %v621_v16 = vpop.trf.xlu0 }
 0x2aa   : > { %v666_v17 = vpack.c.bf16 %v621_v16, %v620_v14  ;;  %v653_v21 = vpop.trf.xlu1 }
 0x2ab   : > { %v674_v42 = vpack.c.bf16 %v653_v21, %v652_v19 }
 0x2ac   : > { %1080 = vmatprep.mubr.msk.bf16.mxu1 %vm527_vm1, %v666_v17 }
 0x2ad   : > { %v622_v18 = vpop.trf.xlu0 }
 0x2ae   : > { %v654_v24 = vpop.trf.xlu1 }
 0x2b1   : > { %v623_v0 = vpop.trf.xlu0 }
 0x2b2   : > { %v667_v20 = vpack.c.bf16 %v623_v0, %v622_v18  ;;  %v655_v27 = vpop.trf.xlu1 }
 0x2b3   : > { %v675_v44 = vpack.c.bf16 %v655_v27, %v654_v24 }
 0x2b4   : > { %1081 = vmatmul.mubr.msk.bf16.gmra.mrb[12].mxu1 %vm527_vm1, %v667_v20 }
 0x2b5   : > { %v624_v22 = vpop.trf.xlu0 }
 0x2b6   : > { %v656_v31 = vpop.trf.xlu1 }
 0x2b9   : > { %v625_v23 = vpop.trf.xlu0 }
 0x2ba   : > { %v668_v25 = vpack.c.bf16 %v625_v23, %v624_v22  ;;  %v657_v34 = vpop.trf.xlu1 }
 0x2bb   : > { %v676_v45 = vpack.c.bf16 %v657_v34, %v656_v31 }
 0x2bc   : > { %1084 = vmatprep.mubr.msk.bf16.mxu1 %vm527_vm1, %v668_v25 }
 0x2bd   : > { %v626_v26 = vpop.trf.xlu0 }
 0x2be   : > { %v658_v37 = vpop.trf.xlu1 }
 0x2c1   : > { %v627_v28 = vpop.trf.xlu0 }
 0x2c2   : > { %v669_v29 = vpack.c.bf16 %v627_v28, %v626_v26  ;;  %v659_v40 = vpop.trf.xlu1 }
 0x2c3   : > { %v677_v48 = vpack.c.bf16 %v659_v40, %v658_v37 }
 0x2c4   : > { %1085 = vmatmul.mubr.msk.bf16.gmra.mrb[16].mxu1 %vm527_vm1, %v669_v29 }
 0x2c5   : > { %v628_v30 = vpop.trf.xlu0 }
 0x2c6   : > { %v660_v43 = vpop.trf.xlu1 }
 0x2c9   : > { %v629_v32 = vpop.trf.xlu0 }
 0x2ca   : > { %v670_v33 = vpack.c.bf16 %v629_v32, %v628_v30  ;;  %v661_v46 = vpop.trf.xlu1 }
 0x2cb   : > { %v678_v49 = vpack.c.bf16 %v661_v46, %v660_v43 }
 0x2cc   : > { %1088 = vmatprep.mubr.msk.bf16.mxu1 %vm527_vm1, %v670_v33 }
 0x2cd   : > { %v630_v35 = vpop.trf.xlu0 }
 0x2ce   : > { %v662_v47 = vpop.trf.xlu1 }
 0x2d1   : > { %v631_v36 = vpop.trf.xlu0 }
 0x2d2   : > { %v671_v38 = vpack.c.bf16 %v631_v36, %v630_v35  ;;  %v663_v3 = vpop.trf.xlu1 }
 0x2d3   : > { %v679_v50 = vpack.c.bf16 %v663_v3, %v662_v47 }
 0x2d4   : > { %1089 = vmatmul.mubr.msk.bf16.gmra.mrb[20].mxu1 %vm527_vm1, %v671_v38 }
 0x2d5   : > { %1092 = vmatprep.mubr.msk.bf16.mxu1 %vm527_vm1, %v672_v39 }
 0x2dc   : > { %1093 = vmatmul.mubr.msk.bf16.gmra.mrb[24].mxu1 %vm527_vm1, %v673_v41 }
 0x2dd   : > { %1096 = vmatprep.mubr.msk.bf16.mxu1 %vm527_vm1, %v674_v42 }
 0x2e4   : > { %1097 = vmatmul.mubr.msk.bf16.gmra.mrb[28].mxu1 %vm527_vm1, %v675_v44 }
 0x2e5   : > { %1100 = vmatprep.mubr.msk.bf16.mxu1 %vm527_vm1, %v676_v45 }
 0x2ec   : > { %1101 = vmatmul.mubr.msk.bf16.gmra.mrb[32].mxu1 %vm527_vm1, %v677_v48 }
 0x2ed   : > { %1104 = vmatprep.mubr.msk.bf16.mxu1 %vm527_vm1, %v678_v49 }
 0x2f4   : > { %1105 = vmatmul.mubr.msk.bf16.gmra.mrb[36].mxu1 %vm527_vm1, %v679_v50 }
 0x377   : > { %v1078_v52 = vpop.f32.mrb[8].mxu1 }
 0x378   : > { %v789_v53 = vadd.f32 %v1078_v52, %v1324_v51  ;;  %v780_v54 = vpop.f32.mrb[9].mxu1 }
 0x379   : > { %v781_v55 = vadd.f32 %v1324_v51, %v780_v54  ;;  %v1079_v56 = vpop.f32.mrb[10].mxu1 }
 0x37a   : > { %910 = vst.msk [vmem:[%s1331_s20 + $0x10] sm:$0xff] %vm907_vm2, %v789_v53  ;;  %v792_v57 = vadd.f32 %v1079_v56, %v1324_v51  ;;  %v783_v58 = vpop.f32.mrb[11].mxu1 }
 0x37b   : > { %908 = vst.msk [vmem:[%s1331_s20] sm:$0xff] %vm907_vm2, %v781_v55  ;;  %v784_v59 = vadd.f32 %v1324_v51, %v783_v58 }
 0x37c   : > { %911 = vst.msk [vmem:[%s1331_s20 + $0x18] sm:$0xff] %vm907_vm2, %v792_v57 }
 0x37d   : > { %909 = vst.msk [vmem:[%s1331_s20 + $0x8] sm:$0xff] %vm907_vm2, %v784_v59 }
 0x387   : > { %v1082_v60 = vpop.f32.mrb[12].mxu1 }
 0x388   : > { %v805_v61 = vadd.f32 %v1082_v60, %v1324_v51  ;;  %v796_v62 = vpop.f32.mrb[13].mxu1 }
 0x389   : > { %v797_v63 = vadd.f32 %v1324_v51, %v796_v62  ;;  %v1083_v1 = vpop.f32.mrb[14].mxu1 }
 0x38a   : > { %914 = vst.msk [vmem:[%s1331_s20 + $0x30] sm:$0xff] %vm907_vm2, %v805_v61  ;;  %v808_v2 = vadd.f32 %v1083_v1, %v1324_v51  ;;  %v799_v4 = vpop.f32.mrb[15].mxu1 }
 0x38b   : > { %912 = vst.msk [vmem:[%s1331_s20 + $0x20] sm:$0xff] %vm907_vm2, %v797_v63  ;;  %v800_v5 = vadd.f32 %v1324_v51, %v799_v4 }
 0x38c   : > { %915 = vst.msk [vmem:[%s1331_s20 + $0x38] sm:$0xff] %vm907_vm2, %v808_v2 }
 0x38d   : > { %913 = vst.msk [vmem:[%s1331_s20 + $0x28] sm:$0xff] %vm907_vm2, %v800_v5 }
 0x397   : > { %v1086_v6 = vpop.f32.mrb[16].mxu1 }
 0x398   : > { %v821_v7 = vadd.f32 %v1086_v6, %v1324_v51  ;;  %v812_v8 = vpop.f32.mrb[17].mxu1 }
 0x399   : > { %v813_v9 = vadd.f32 %v1324_v51, %v812_v8  ;;  %v1087_v10 = vpop.f32.mrb[18].mxu1 }
 0x39a   : > { %918 = vst.msk [vmem:[%s1331_s20 + $0x50] sm:$0xff] %vm907_vm2, %v821_v7  ;;  %v824_v11 = vadd.f32 %v1087_v10, %v1324_v51  ;;  %v815_v12 = vpop.f32.mrb[19].mxu1 }
 0x39b   : > { %916 = vst.msk [vmem:[%s1331_s20 + $0x40] sm:$0xff] %vm907_vm2, %v813_v9  ;;  %v816_v13 = vadd.f32 %v1324_v51, %v815_v12 }
 0x39c   : > { %919 = vst.msk [vmem:[%s1331_s20 + $0x58] sm:$0xff] %vm907_vm2, %v824_v11 }
 0x39d   : > { %917 = vst.msk [vmem:[%s1331_s20 + $0x48] sm:$0xff] %vm907_vm2, %v816_v13 }
 0x3a7   : > { %v1090_v14 = vpop.f32.mrb[20].mxu1 }
 0x3a8   : > { %v837_v15 = vadd.f32 %v1090_v14, %v1324_v51  ;;  %v828_v16 = vpop.f32.mrb[21].mxu1 }
 0x3a9   : > { %v829_v17 = vadd.f32 %v1324_v51, %v828_v16  ;;  %v1091_v18 = vpop.f32.mrb[22].mxu1 }
 0x3aa   : > { %922 = vst.msk [vmem:[%s1331_s20 + $0x70] sm:$0xff] %vm907_vm2, %v837_v15  ;;  %v840_v19 = vadd.f32 %v1091_v18, %v1324_v51  ;;  %v831_v0 = vpop.f32.mrb[23].mxu1 }
 0x3ab   : > { %920 = vst.msk [vmem:[%s1331_s20 + $0x60] sm:$0xff] %vm907_vm2, %v829_v17  ;;  %v832_v20 = vadd.f32 %v1324_v51, %v831_v0 }
 0x3ac   : > { %923 = vst.msk [vmem:[%s1331_s20 + $0x78] sm:$0xff] %vm907_vm2, %v840_v19 }
 0x3ad   : > { %921 = vst.msk [vmem:[%s1331_s20 + $0x68] sm:$0xff] %vm907_vm2, %v832_v20 }
 0x3af   : > { %v1094_v21 = vpop.f32.mrb[24].mxu1 }
 0x3b0   : > { %v853_v22 = vadd.f32 %v1094_v21, %v1324_v51  ;;  %v844_v23 = vpop.f32.mrb[25].mxu1 }
 0x3b1   : > { %v845_v24 = vadd.f32 %v1324_v51, %v844_v23  ;;  %v1095_v25 = vpop.f32.mrb[26].mxu1 }
 0x3b2   : > { %926 = vst.msk [vmem:[%s1331_s20 + $0x90] sm:$0xff] %vm907_vm2, %v853_v22  ;;  %v856_v26 = vadd.f32 %v1095_v25, %v1324_v51  ;;  %v847_v27 = vpop.f32.mrb[27].mxu1 }
 0x3b3   : > { %924 = vst.msk [vmem:[%s1331_s20 + $0x80] sm:$0xff] %vm907_vm2, %v845_v24  ;;  %v848_v28 = vadd.f32 %v1324_v51, %v847_v27 }
 0x3b4   : > { %927 = vst.msk [vmem:[%s1331_s20 + $0x98] sm:$0xff] %vm907_vm2, %v856_v26 }
 0x3b5   : > { %925 = vst.msk [vmem:[%s1331_s20 + $0x88] sm:$0xff] %vm907_vm2, %v848_v28 }
 0x3b7   : > { %v1098_v29 = vpop.f32.mrb[28].mxu1 }
 0x3b8   : > { %v869_v30 = vadd.f32 %v1098_v29, %v1324_v51  ;;  %v860_v31 = vpop.f32.mrb[29].mxu1 }
 0x3b9   : > { %v861_v32 = vadd.f32 %v1324_v51, %v860_v31  ;;  %v1099_v33 = vpop.f32.mrb[30].mxu1 }
 0x3ba   : > { %930 = vst.msk [vmem:[%s1331_s20 + $0xb0] sm:$0xff] %vm907_vm2, %v869_v30  ;;  %v872_v34 = vadd.f32 %v1099_v33, %v1324_v51  ;;  %v863_v35 = vpop.f32.mrb[31].mxu1 }
 0x3bb   : > { %928 = vst.msk [vmem:[%s1331_s20 + $0xa0] sm:$0xff] %vm907_vm2, %v861_v32  ;;  %v864_v36 = vadd.f32 %v1324_v51, %v863_v35 }
 0x3bc   : > { %931 = vst.msk [vmem:[%s1331_s20 + $0xb8] sm:$0xff] %vm907_vm2, %v872_v34 }
 0x3bd   : > { %929 = vst.msk [vmem:[%s1331_s20 + $0xa8] sm:$0xff] %vm907_vm2, %v864_v36 }
 0x3bf   : > { %v1102_v37 = vpop.f32.mrb[32].mxu1 }
 0x3c0   : > { %v885_v38 = vadd.f32 %v1102_v37, %v1324_v51  ;;  %v876_v39 = vpop.f32.mrb[33].mxu1 }
 0x3c1   : > { %v877_v40 = vadd.f32 %v1324_v51, %v876_v39  ;;  %v1103_v41 = vpop.f32.mrb[34].mxu1 }
 0x3c2   : > { %934 = vst.msk [vmem:[%s1331_s20 + $0xd0] sm:$0xff] %vm907_vm2, %v885_v38  ;;  %v888_v42 = vadd.f32 %v1103_v41, %v1324_v51  ;;  %v879_v43 = vpop.f32.mrb[35].mxu1 }
 0x3c3   : > { %932 = vst.msk [vmem:[%s1331_s20 + $0xc0] sm:$0xff] %vm907_vm2, %v877_v40  ;;  %v880_v44 = vadd.f32 %v1324_v51, %v879_v43 }
 0x3c4   : > { %935 = vst.msk [vmem:[%s1331_s20 + $0xd8] sm:$0xff] %vm907_vm2, %v888_v42 }
 0x3c5   : > { %933 = vst.msk [vmem:[%s1331_s20 + $0xc8] sm:$0xff] %vm907_vm2, %v880_v44 }
 0x3c7   : > { %v1106_v45 = vpop.f32.mrb[36].mxu1 }
 0x3c8   : > { %v901_v46 = vadd.f32 %v1106_v45, %v1324_v51  ;;  %v892_v47 = vpop.f32.mrb[37].mxu1 }
 0x3c9   : > { %v893_v48 = vadd.f32 %v1324_v51, %v892_v47  ;;  %v1107_v49 = vpop.f32.mrb[38].mxu1 }
 0x3ca   : > { %938 = vst.msk [vmem:[%s1331_s20 + $0xf0] sm:$0xff] %vm907_vm2, %v901_v46  ;;  %v904_v3 = vadd.f32 %v1107_v49, %v1324_v51  ;;  %v895_v50 = vpop.f32.mrb[39].mxu1 }
 0x3cb   : > { %936 = vst.msk [vmem:[%s1331_s20 + $0xe0] sm:$0xff] %vm907_vm2, %v893_v48  ;;  %v896_v52 = vadd.f32 %v1324_v51, %v895_v50 }
 0x3cc   : > { %939 = vst.msk [vmem:[%s1331_s20 + $0xf8] sm:$0xff] %vm907_vm2, %v904_v3 }
 0x3cd   : > { %937 = vst.msk [vmem:[%s1331_s20 + $0xe8] sm:$0xff] %vm907_vm2, %v896_v52 }
 0x3ce PF: > { %s17_s24 = sadd.s32 1, %s1140_s24  }
 0x3cf   : > { %p14_p4 = scmp.ge.s32.totalorder %s17_s24, 4  }
 0x3d1   :  { %16 = sbr.rel (!%p14_p4) target bundleno = 1 (0x1), region = 78 }

</bundles_post_ra>
